<compile_context>
chip_gen: v6e
topology: v6e:2x2x1
jax: 0.10.0
libtpu: 0.0.40
codegen_flags: <defaults>
</compile_context>

<pallas_src>
import math

import jax
import jax.numpy as jnp
from jax.experimental import pallas as pl
from jax.experimental.pallas import tpu as pltpu


def fixed_embedding_table(c_in, d_model):
    """Exactly mirrors the PyTorch FixedEmbedding.__init__ table construction."""
    position = jnp.arange(c_in, dtype=jnp.float32)[:, None]               # (c_in, 1)
    div_term = jnp.exp(
        jnp.arange(0, d_model, 2, dtype=jnp.float32)
        * -(math.log(10000.0) / d_model)
    )                                                                     # (d_model//2,)
    angles = position * div_term                                          # (c_in, d_model//2)
    w = jnp.zeros((c_in, d_model), dtype=jnp.float32)
    w = w.at[:, 0::2].set(jnp.sin(angles))
    w = w.at[:, 1::2].set(jnp.cos(angles))
    return w


def fixed_embedding_kernel(idx_ref, table_ref, out_ref):
    # idx_ref: (R, 1) int32, table_ref: (C, D) f32, out_ref: (R, D)
    idx = idx_ref[...]                                   # (R, 1)
    table = table_ref[...]                               # (C, D)
    R = idx.shape[0]
    C = table.shape[0]
    # One-hot gather on the MXU: onehot[r, c] = (idx[r] == c).
    onehot = (jax.lax.broadcasted_iota(jnp.int32, (R, C), 1) == idx)
    onehot = onehot.astype(table.dtype)                  # (R, C)
    out = jnp.dot(onehot, table, preferred_element_type=jnp.float32)
    out_ref[...] = out.astype(out_ref.dtype)


def fixed_embedding(x, table, *, block_rows=256):
    """x: integer indices of any shape; table: (c_in, d_model) f32.

    Returns table[x] with shape x.shape + (d_model,), matching
    FixedEmbedding.forward (the .detach() is a no-op numerically).
    """
    C, D = table.shape
    orig_shape = x.shape
    N = 1
    for s in orig_shape:
        N *= s
    x_flat = x.reshape(N, 1).astype(jnp.int32)

    # Row-tile size: full N if it fits in one block, otherwise a sublane-aligned
    # tile (block_rows is a multiple of 8). Edge blocks are handled by Pallas
    # (padded reads; out-of-range writes discarded).
    R = N if N <= block_rows else block_rows
    grid = (pl.cdiv(N, R),)

    cost = pl.CostEstimate(
        flops=2 * N * C * D,
        transcendentals=0,
        bytes_accessed=4 * N + 4 * C * D + 4 * N * D,
    )

    out = pl.pallas_call(
        fixed_embedding_kernel,
        out_shape=jax.ShapeDtypeStruct((N, D), table.dtype),
        grid_spec=pl.GridSpec(
            grid=grid,
            in_specs=[
                # Row tile of flattened indices.
                pl.BlockSpec((R, 1), lambda i: (i, 0)),
                # Full table, resident in VMEM across the whole grid.
                pl.BlockSpec((C, D), lambda i: (0, 0)),
            ],
            out_specs=pl.BlockSpec((R, D), lambda i: (i, 0)),
        ),
        compiler_params=pltpu.CompilerParams(
            dimension_semantics=("parallel",),
            vmem_limit_bytes=32 * 1024 * 1024,
        ),
        cost_estimate=cost,
    )(x_flat, table)

    return out.reshape(*orig_shape, D)


def fixed_embedding_ref(x, table):
    """Pure-JAX reference: exact embedding-row gather."""
    return jnp.take(table, x, axis=0)


if __name__ == "__main__":
    # Small shapes consistent with the module: batch=2, seq=8, c_in=24 (e.g.
    # hour-of-day vocabulary), d_model=32.
    B, L = 2, 8
    c_in, d_model = 24, 32

    key = jax.random.PRNGKey(0)
    x = jax.random.randint(key, (B, L), 0, c_in, dtype=jnp.int32)

    table = fixed_embedding_table(c_in, d_model)

    out = fixed_embedding(x, table)
    out = jax.block_until_ready(out)

    ref = fixed_embedding_ref(x, table)
    assert out.shape == (B, L, d_model), out.shape
    assert jnp.allclose(out, ref, atol=1e-5, rtol=1e-5), "mismatch vs reference"

    print("KERNEL_OK")
</pallas_src>

<mosaic_0001>
module attributes {stable_mosaic.version = 11 : i64} {
  func.func @fixed_embedding_kernel(%arg0: i32, %arg1: memref<16x1xi32, #tpu.memory_space<vmem>>, %arg2: memref<24x32xf32, #tpu.memory_space<vmem>>, %arg3: memref<16x32xf32, #tpu.memory_space<vmem>>) attributes {dimension_semantics = [#tpu.dimension_semantics<parallel>], iteration_bounds = array<i64: 1>, scalar_prefetch = 0 : i64, scratch_operands = 0 : i64, tpu.core_type = #tpu.core_type<tc>, window_params = [{transform_indices = @transform_0, window_bounds = array<i64: 16, 1>}, {pipeline_mode = #tpu.pipeline_mode<synchronous>, transform_indices = @transform_1, window_bounds = array<i64: 24, 32>}, {transform_indices = @transform_2, window_bounds = array<i64: 16, 32>}]} {
    %c0 = arith.constant 0 : index
    %c0_0 = arith.constant 0 : index
    %0 = vector.load %arg1[%c0, %c0_0] : memref<16x1xi32, #tpu.memory_space<vmem>>, vector<16x1xi32>
    %c0_1 = arith.constant 0 : index
    %c0_2 = arith.constant 0 : index
    %1 = vector.load %arg2[%c0_1, %c0_2] : memref<24x32xf32, #tpu.memory_space<vmem>>, vector<24x32xf32>
    %2 = tpu.iota {dimensions = array<i32: 1>} : vector<16x24xi32>
    %3 = vector.broadcast %0 : vector<16x1xi32> to vector<16x24xi32>
    %4 = arith.cmpi eq, %2, %3 : vector<16x24xi32>
    %5 = arith.extui %4 : vector<16x24xi1> to vector<16x24xi32>
    %6 = arith.sitofp %5 : vector<16x24xi32> to vector<16x24xf32>
    %cst = arith.constant dense<0.000000e+00> : vector<16x32xf32>
    %7 = tpu.matmul %6, %1, %cst {dimension_numbers = #tpu.dot_dimension_numbers<[1], [0], [0], [1], [0, 0, 1, 1], [], []>} : vector<16x24xf32>, vector<24x32xf32>, vector<16x32xf32> -> vector<16x32xf32>
    %c0_3 = arith.constant 0 : index
    %c0_4 = arith.constant 0 : index
    %8 = vector.load %arg3[%c0_3, %c0_4] : memref<16x32xf32, #tpu.memory_space<vmem>>, vector<16x32xf32>
    tpu.vector_store %arg3[%c0_3, %c0_4], %7 {strides = array<i32>} : memref<16x32xf32, #tpu.memory_space<vmem>>, vector<16x32xf32>,
    return
  }
  func.func @transform_0(%arg0: i32) -> (i32, i32) {
    %c0_i32 = arith.constant 0 : i32
    %c0_i32_0 = arith.constant 0 : i32
    return %arg0, %c0_i32 : i32, i32
  }
  func.func @transform_1(%arg0: i32) -> (i32, i32) {
    %c0_i32 = arith.constant 0 : i32
    %c0_i32_0 = arith.constant 0 : i32
    %c0_i32_1 = arith.constant 0 : i32
    return %c0_i32, %c0_i32_0 : i32, i32
  }
  func.func @transform_2(%arg0: i32) -> (i32, i32) {
    %c0_i32 = arith.constant 0 : i32
    %c0_i32_0 = arith.constant 0 : i32
    return %arg0, %c0_i32 : i32, i32
  }
}

</mosaic_0001>

<bundles_post_ra>
// kernel: tpu_custom_call.1
= control target key start
LH: loop header
LB: loop body
LE: loop exit
PB: predicated region body
PF: predicated region fallthrough
CT: control target
= control target key end

     0   :  { %7 = vsyncpa [#allocation3], 0  ;;  %s255_s0 = inlined_call_operand.vmem [shape: s32[16,1], index: 0, kind: input, shape index: {}]   ;;  %s256_s1 = inlined_call_operand.hbm [shape: f32[24,32], index: 1, kind: input, shape index: {}]   ;;  %s257_s2 = inlined_call_operand.hbm [shape: f32[16,32], index: 2, kind: output, shape index: {}]  }
   0x1   :  { %8 = vsyncpa [#allocation4], 0  ;;  %s216_s9 = smov [#allocation2]  }
   0x2   :  { %s16_s10 = sshll.u32 %s216_s9, 4  ;;  %s17_s10 = int_to_ptr.vmem [resolvable:$true] %s16_s10 }
   0x3   :  { %s180_s11 = scalar_lea.vmem %s17_s10, 384  ;;  %p185_p1 = scmp.lt.s32.totalorder %s17_s10, %s17_s10 }
   0x4   :  { %p181_p0 = scmp.ne.s32.totalorder %s17_s10, %s180_s11  ;;  %p186_p2 = scmp.lt.s32.totalorder %s180_s11, %s180_s11 }
   0x6   :  { %p187_p3 = por %p186_p2, %p185_p1 }
   0x8   :  { %p188_p4 = pnand %p187_p3, %p181_p0 }
   0xa   :  { %191 = shalt.err (!%p188_p4)
}
   0xb   :  { %s217_s12 = smov 128   ;;  %s218_s13 = smov 8  }
   0xc   :  { %22 = dma.hbm_to_vmem [thread:$0]  %s256_s1, 384, %s17_s10, [#allocation3], %s217_s12, %s217_s12, %s218_s13  }
   0xd   :  { %212 = dma.done.wait [#allocation3], 384  }
   0xe   :  { %213 = vsyncadd [#allocation3], 4294966912  ;;  %v219_v0 = vmov 0   ;;  %v26_v1 = vld [vmem:[%s255_s0] sm:$0xff]  ;;  %v30_v2 = vld [vmem:[#allocation2 + $0x10] sm:$0xff]  ;;  %v31_v6 = vlaneseq  ;;  %vm45_vm0 = vcmask 195584  }
   0xf   :  { %171 = vset.pattern.permute.xlu0 %v219_v0  ;;  %156 = vmatprep.subr.mxu0 %v30_v2  ;;  %v29_v3 = vld [vmem:[#allocation2 + $0x8] sm:$0xff]  ;;  %v28_v5 = vld [vmem:[#allocation2] sm:$0xff]  ;;  %v220_v9 = vmov 0.0   ;;  %vm127_vm3 = vcmask 261120  }
  0x10   :  { %34 = vperm.xlu0 %171, %v26_v1   ;;  %v27_v4 = vld [vmem:[%s255_s0 + $0x8] sm:$0xff]  ;;  %157 = vmatpush3.msra.mxu0 %v30_v2  ;;  %v32_v7 = vand.u32 127, %v31_v6  ;;  %s221_s0 = smov [#allocation5]  }
  0x11   :  { %158 = vmatprep.subr.mxu0 %v29_v3  ;;  %s135_s1 = sshll.u32 %s221_s0, 4  ;;  %s136_s1 = int_to_ptr.vmem [resolvable:$true] %s135_s1 }
  0x12   :  { %159 = vmatpush3.msra.mxu0 %v29_v3  ;;  %s192_s20 = scalar_lea.vmem %s136_s1, 256  ;;  %p197_p6 = scmp.lt.s32.totalorder %s136_s1, %s136_s1 }
  0x13   :  { %160 = vmatprep.subr.mxu0 %v28_v5  ;;  %p193_p5 = scmp.ne.s32.totalorder %s136_s1, %s192_s20  ;;  %p198_p7 = scmp.lt.s32.totalorder %s192_s20, %s192_s20 }
  0x14   :  { %37 = vperm.xlu0 %171, %v27_v4   ;;  %161 = vmatpush3.msra.mxu0 %v28_v5 }
  0x15   :  { %p199_p8 = por %p198_p7, %p197_p6 }
  0x17   :  { %p200_p9 = pnand %p199_p8, %p193_p5 }
  0x8b   :  { %v35_v8 = vpop.permute.xlu0 %34 }
  0x8c   :  { %vm39_vm1 = vcmp.eq.s32.totalorder %v32_v7, %v35_v8 }
  0x8d   :  { %v147_v10 = vsel %vm39_vm1, 1.0, %v220_v9 }
  0x8e   :  { %162 = vmatprep.mubr.msk.f32.mxu0 %vm45_vm0, %v147_v10 }
  0x8f   :  { %v38_v11 = vpop.permute.xlu0 %37 }
  0x90   :  { %vm40_vm2 = vcmp.eq.s32.totalorder %v32_v7, %v38_v11 }
  0x91   :  { %v148_v12 = vsel %vm40_vm2, 1.0, %v220_v9 }
  0x92   :  { %163 = vmatmul.mubr.msk.f32.vlgmr.msra.gmra.mxu0 %vm45_vm0, %v148_v12 }
 0x152   :  { %v164_v13 = vpop.f32.mrf.mxu0 }
 0x153   :  { %129 = vst.msk [vmem:[#allocation5 + $0x8] sm:$0xff] %vm127_vm3, %v164_v13 }
 0x154   :  { %v118_v14 = vpop.f32.mrf.mxu0 }
 0x155   :  { %128 = vst.msk [vmem:[#allocation5] sm:$0xff] %vm127_vm3, %v118_v14 }
 0x156   :  { %203 = shalt.err (!%p200_p9)
}
 0x157   :  { %141 = dma.vmem_to_hbm [thread:$0]  %s136_s1, 256, %s257_s2, [#allocation4], %s217_s12, %s217_s12, %s218_s13  }
 0x158   :  { %214 = dma.done.wait [#allocation4], 256  }
 0x159   :  { %215 = vsyncadd [#allocation4], 4294967040 }
 0x15a   :  { %145 = vsyncpa [#allocation3], 1 }
 0x15b   :  { %146 = vsyncpa [#allocation4], 1 }

</bundles_post_ra>
